<compile_context>
chip_gen: v5e
topology: v5e:2x2
jax: 0.10.0
libtpu: 0.0.40
codegen_flags: <defaults>
</compile_context>

<pallas_src>
import functools
import math
import re

import jax
import jax.numpy as jnp
from jax.experimental import pallas as pl
from jax.experimental.pallas import tpu as pltpu

LANE = 128


def _sublane_multiple(dtype):
    itemsize = jnp.dtype(dtype).itemsize
    return {4: 8, 2: 16, 1: 32}.get(itemsize, 8)


def _tpu_generation():
    """Best-effort TPU generation from device_kind; defaults to 6."""
    try:
        kind = jax.devices()[0].device_kind
        m = re.search(r"(\d+)", kind)
        if m:
            return int(m.group(1))
    except Exception:
        pass
    return 6


def _gen_block_params(gen):
    """(target_block_bytes, vmem_limit_bytes or None) per TPU generation.

    Input and output are each double-buffered (4 live buffers), so the scoped
    VMEM budget must cover ~4x the block size with some headroom.
    """
    if gen >= 7:
        # ~3.2 TB/s HBM: bigger blocks amortize the ~0.35us/step overhead.
        # 6 MiB blocks -> 24 MiB of buffers; raise the limit (64 MiB physical).
        return 6 * 1024 * 1024, 48 * 1024 * 1024
    if gen == 6:
        # 4 MiB blocks -> 16 MiB of buffers, inside the 32 MiB default.
        return 4 * 1024 * 1024, 32 * 1024 * 1024
    # v5e and older: 2 MiB blocks -> 8 MiB, inside the 16 MiB default.
    return 2 * 1024 * 1024, None


def _tanh_scaled_kernel(x_ref, o_ref, *, scale):
    # Elementwise; VPU/EUP work is hidden under the HBM DMA time, so upcasting
    # to f32 and using a true divide (bit-parity with torch's x / scale) are
    # free.
    x = x_ref[...].astype(jnp.float32)
    o_ref[...] = (jnp.tanh(x / scale) * scale).astype(o_ref.dtype)


def _choose_width(n, sub):
    """Widest lane-dense width dividing n, preferring a sublane-friendly row
    count (rows >= sub, ideally rows % sub == 0) for full vreg occupancy."""
    widths = (2048, 1024, 512, 256, 128)
    divides = [w for w in widths if n % w == 0]
    if not divides:
        return None
    for w in divides:
        rows = n // w
        if rows >= sub and rows % sub == 0:
            return w
    for w in divides:
        if n // w >= sub:
            return w
    return divides[0]


def _choose_block_rows(rows, width, itemsize, sub, gen, target_bytes):
    row_bytes = width * itemsize
    target_rows = max(sub, (target_bytes // row_bytes) // sub * sub)

    if target_rows >= rows:
        # Whole slab fits in one block.
        if gen >= 7 and rows >= 2 * sub:
            # v7x has two TensorCores: split into two blocks so the "parallel"
            # grid axis can be sharded across them.
            return max(sub, pl.cdiv(pl.cdiv(rows, 2), sub) * sub)
        # Single-TC chips: one full-extent block, no extra grid-step overhead.
        return rows

    block_rows = target_rows
    if gen >= 7:
        # Prefer an even grid length so both TensorCores get equal work.
        cand = block_rows
        for _ in range(4):
            if cand < sub:
                break
            if pl.cdiv(rows, cand) % 2 == 0:
                return cand
            cand -= sub
    return block_rows


def _compiler_params(vmem_limit):
    kwargs = dict(dimension_semantics=("parallel",))
    if vmem_limit is not None:
        kwargs["vmem_limit_bytes"] = vmem_limit
    return pltpu.CompilerParams(**kwargs)


def _run_slab(slab, scale, block_rows, width, vmem_limit):
    rows = slab.shape[0]
    return pl.pallas_call(
        functools.partial(_tanh_scaled_kernel, scale=scale),
        out_shape=jax.ShapeDtypeStruct(slab.shape, slab.dtype),
        grid_spec=pltpu.PrefetchScalarGridSpec(
            num_scalar_prefetch=0,
            grid=(pl.cdiv(rows, block_rows),),
            in_specs=[pl.BlockSpec((block_rows, width), lambda i: (i, 0))],
            out_specs=pl.BlockSpec((block_rows, width), lambda i: (i, 0)),
        ),
        compiler_params=_compiler_params(vmem_limit),
    )(slab)


def _run_flat_whole(flat, scale):
    # Small arrays: whole-array single block (no grid) — always legal.
    return pl.pallas_call(
        functools.partial(_tanh_scaled_kernel, scale=scale),
        out_shape=jax.ShapeDtypeStruct(flat.shape, flat.dtype),
    )(flat)


def _run_flat_blocked(flat, scale, block_len, vmem_limit):
    # Large ragged arrays: 1-D grid; Pallas masks the out-of-bounds tail of
    # the final block, so no padding / slicing round trip is needed.
    n = flat.shape[0]
    return pl.pallas_call(
        functools.partial(_tanh_scaled_kernel, scale=scale),
        out_shape=jax.ShapeDtypeStruct(flat.shape, flat.dtype),
        grid_spec=pltpu.PrefetchScalarGridSpec(
            num_scalar_prefetch=0,
            grid=(pl.cdiv(n, block_len),),
            in_specs=[pl.BlockSpec((block_len,), lambda i: (i,))],
            out_specs=pl.BlockSpec((block_len,), lambda i: (i,)),
        ),
        compiler_params=_compiler_params(vmem_limit),
    )(flat)


def tanh_scaled(x, scale):
    """Applies tanh(x / scale) * scale elementwise via a Pallas TPU kernel.

    `scale` must be a static (Python) positive number, matching the PyTorch
    module where it is fixed at construction time.
    """
    try:
        scale = float(scale)
    except Exception as e:
        raise TypeError(
            "TanhScaled: `scale` must be a static Python number (it is fixed "
            "at module construction time); got a traced / non-numeric value."
        ) from e
    if not scale > 0:
        raise ValueError("Only positive scales allowed.")

    orig_shape = x.shape
    dtype = x.dtype
    itemsize = jnp.dtype(dtype).itemsize
    sub = _sublane_multiple(dtype)
    gen = _tpu_generation()
    target_bytes, vmem_limit = _gen_block_params(gen)

    n = math.prod(orig_shape) if orig_shape else 1
    if n == 0:
        return x

    flat = x.reshape(-1)

    width = _choose_width(n, sub)
    if width is not None:
        # Copy-free lane-dense 2-D slab (no padding): (rows, width).
        rows = n // width
        block_rows = _choose_block_rows(rows, width, itemsize, sub, gen, target_bytes)
        out = _run_slab(flat.reshape(rows, width), scale, block_rows, width, vmem_limit)
        return out.reshape(orig_shape)

    # Ragged total size (not a multiple of 128): single pass over the flat 1-D
    # array; the final partial block is bounds-masked by Pallas.
    tile = sub * LANE
    if n < tile or n * itemsize <= target_bytes:
        out = _run_flat_whole(flat, scale)
    else:
        block_len = max(tile, (target_bytes // itemsize) // tile * tile)
        out = _run_flat_blocked(flat, scale, block_len, vmem_limit)
    return out.reshape(orig_shape)


if __name__ == "__main__":
    key = jax.random.PRNGKey(0)
    scale = 2.5

    # NCHW feature map, typical use of the module: batch=2, C=4, H=W=16.
    x = jax.random.normal(key, (2, 4, 16, 16), dtype=jnp.float32) * 3.0
    y = jax.block_until_ready(tanh_scaled(x, scale))
    y_ref = jnp.tanh(x / scale) * scale
    assert y.shape == x.shape and y.dtype == x.dtype
    assert jnp.allclose(y, y_ref, atol=1e-5, rtol=1e-5)

    # Ragged element count (3*5*11 = 165, not a multiple of 128): exercises
    # the 1-D no-pad fallback path.
    x2 = jax.random.normal(jax.random.PRNGKey(1), (3, 5, 11), dtype=jnp.float32) * 3.0
    y2 = jax.block_until_ready(tanh_scaled(x2, scale))
    assert y2.shape == x2.shape and y2.dtype == x2.dtype
    assert jnp.allclose(y2, jnp.tanh(x2 / scale) * scale, atol=1e-5, rtol=1e-5)

    print("KERNEL_OK")
</pallas_src>

<mosaic_0001>
module attributes {stable_mosaic.version = 11 : i64} {
  func.func @_tanh_scaled_kernel(%arg0: i32, %arg1: memref<8x256xf32, #tpu.memory_space<vmem>>, %arg2: memref<8x256xf32, #tpu.memory_space<vmem>>) attributes {dimension_semantics = [#tpu.dimension_semantics<parallel>], iteration_bounds = array<i64: 1>, scalar_prefetch = 0 : i64, scratch_operands = 0 : i64, tpu.core_type = #tpu.core_type<tc>, window_params = [{transform_indices = @transform_0, window_bounds = array<i64: 8, 256>}, {transform_indices = @transform_1, window_bounds = array<i64: 8, 256>}]} {
    %c0 = arith.constant 0 : index
    %c0_0 = arith.constant 0 : index
    %0 = vector.load %arg1[%c0, %c0_0] : memref<8x256xf32, #tpu.memory_space<vmem>>, vector<8x256xf32>
    %cst = arith.constant 2.500000e+00 : f32
    %1 = vector.broadcast %cst : f32 to vector<8x256xf32>
    %2 = arith.divf %0, %1 : vector<8x256xf32>
    %3 = math.tanh %2 : vector<8x256xf32>
    %cst_1 = arith.constant 2.500000e+00 : f32
    %4 = vector.broadcast %cst_1 : f32 to vector<8x256xf32>
    %5 = arith.mulf %3, %4 : vector<8x256xf32>
    %c0_2 = arith.constant 0 : index
    %c0_3 = arith.constant 0 : index
    %6 = vector.load %arg2[%c0_2, %c0_3] : memref<8x256xf32, #tpu.memory_space<vmem>>, vector<8x256xf32>
    tpu.vector_store %arg2[%c0_2, %c0_3], %5 {strides = array<i32>} : memref<8x256xf32, #tpu.memory_space<vmem>>, vector<8x256xf32>,
    return
  }
  func.func @transform_0(%arg0: i32) -> (i32, i32) {
    %c0_i32 = arith.constant 0 : i32
    %c0_i32_0 = arith.constant 0 : i32
    return %arg0, %c0_i32 : i32, i32
  }
  func.func @transform_1(%arg0: i32) -> (i32, i32) {
    %c0_i32 = arith.constant 0 : i32
    %c0_i32_0 = arith.constant 0 : i32
    return %arg0, %c0_i32 : i32, i32
  }
}

</mosaic_0001>

<bundles_post_ra>
// kernel: tpu_custom_call.1
= control target key start
LH: loop header
LB: loop body
LE: loop exit
PB: predicated region body
PF: predicated region fallthrough
CT: control target
= control target key end

     0   :  { %6 = vsyncpa [#allocation3], 0  ;;  %s137_s0 = inlined_call_operand.hbm [shape: f32[8,256], index: 0, kind: input, shape index: {}]   ;;  %s138_s1 = inlined_call_operand.hbm [shape: f32[8,256], index: 1, kind: output, shape index: {}]  }
   0x1   :  { %7 = vsyncpa [#allocation4], 0  ;;  %s13_s8 = sshll.u32 %s137_s0, 4  ;;  %s118_s9 = smov [#allocation2]   ;;  %s14_s8 = int_to_ptr.hbm [resolvable:$true] %s13_s8 }
   0x2   :  { %s15_s10 = sshll.u32 %s118_s9, 4  ;;  %s16_s10 = int_to_ptr.vmem [resolvable:$true] %s15_s10 }
   0x3   :  { %18 = dma.hbm_to_vmem [thread:$0]  %s14_s8, 256, %s16_s10, [#allocation3]  }
   0x4   :  { %114 = dma.done.wait [#allocation3], 256  }
   0x5   :  { %115 = vsyncadd [#allocation3], 4294967040  ;;  %v119_v0 = vmov 2.5   ;;  %v23_v5 = vld [vmem:[#allocation2] sm:$0xff]  ;;  %v24_v7 = vld [vmem:[#allocation2 + $0x8] sm:$0xff]  ;;  %s120_s0 = smov [#allocation5]  }
   0x6   :  { %60 = vrcp.f32 %v119_v0  ;;  %s45_s11 = sshll.u32 %s120_s0, 4  ;;  %s47_s14 = sshll.u32 %s138_s1, 4  ;;  %s46_s11 = int_to_ptr.vmem [resolvable:$true] %s45_s11  ;;  %s48_s14 = int_to_ptr.hbm [resolvable:$true] %s47_s14 }
   0xc   :  { %v61_v1 = vpop.eup %60 }
   0xd   :  { %v26_v2 = vmul.f32 2.5, %v61_v1  ;;  %vm30_vm0 = vweird.f32 %v61_v1 }
   0xf   :  { %v27_v3 = vsub.f32 1.0, %v26_v2 }
  0x11   :  { %v28_v4 = vmul.f32 %v61_v1, %v27_v3 }
  0x13   :  { %v29_v6 = vadd.f32 %v61_v1, %v28_v4 }
  0x15   :  { %v31_v8 = vsel %vm30_vm0, %v61_v1, %v29_v6 }
  0x16   :  { %v32_v9 = vmul.f32 %v31_v8, %v23_v5  ;;  %v33_v10 = vmul.f32 %v31_v8, %v24_v7 }
  0x18   :  { %62 = vtanh.f32 %v32_v9 }
  0x19   :  { %64 = vtanh.f32 %v33_v10 }
  0x1e   :  { %v63_v11 = vpop.eup %62 }
  0x1f   :  { %v65_v12 = vpop.eup %64  ;;  %v36_v13 = vmul.f32 2.5, %v63_v11 }
  0x20   :  { %v37_v14 = vmul.f32 2.5, %v65_v12 }
  0x21   :  { %38 = vst [vmem:[#allocation5] sm:$0xff] %v36_v13 }
  0x22   :  { %39 = vst [vmem:[#allocation5 + $0x8] sm:$0xff] %v37_v14 }
  0x23   :  { %50 = dma.vmem_to_hbm [thread:$0]  %s46_s11, 256, %s48_s14, [#allocation4]  }
  0x24   :  { %116 = dma.done.wait [#allocation4], 256  }
  0x25   :  { %117 = vsyncadd [#allocation4], 4294967040 }
  0x26   :  { %55 = vsyncpa [#allocation3], 1 }
  0x27   :  { %56 = vsyncpa [#allocation4], 1 }

</bundles_post_ra>
